<compile_context>
chip_gen: v6e
topology: v6e:2x2x1
jax: 0.10.0
libtpu: 0.0.40
codegen_flags: <defaults>
</compile_context>

<pallas_src>
import functools

import jax
import jax.numpy as jnp
from jax import lax
from jax.experimental import pallas as pl
from jax.experimental.pallas import tpu as pltpu


def _pick_tq(n_pad, vmem_cap_bytes):
    """Query-tile size: full sequence for small N, else a 128-multiple tile."""
    if n_pad <= 512:
        return n_pad
    if vmem_cap_bytes >= (100 << 20):          # 128 MiB parts (v5e / v6e): go big
        candidates = (1024, 512, 256, 128)
    elif n_pad >= 2048:                        # 64 MiB parts (v7x), large N: cap
        candidates = (256, 128)
    else:
        candidates = (512, 256, 128)
    for t in candidates:
        if n_pad % t == 0:
            return t
    return n_pad                               # unreachable when n_pad % 128 == 0


def _bam_attn_kernel(x_ref, wq_ref, bq_ref, wkt_ref, bk_ref, wvt_ref, bv_ref,
                     o_ref, q_s, k_s, v_s, *, c, tq, n_valid, n_pad):
    # x_ref  : (1, N_pad, C) bf16 pooled tokens for the current batch element
    # wq_ref : (C, Cq)  bf16 (softmax scale folded in)   bq_ref : (1, Cq)  f32
    # wkt_ref: (Cq, C)  bf16                             bk_ref : (Cq, 1)  f32
    # wvt_ref: (C, C)   bf16                             bv_ref : (C, 1)   f32
    # o_ref  : (1, C, TQ) f32 channel-major output tile
    # q_s (N_pad, Cq) / k_s (Cq, N_pad) / v_s (C+1, N_pad)  bf16 persistent scratch
    qi = pl.program_id(1)

    # Per-batch QKV projections, computed once (scratch persists across qi).
    @pl.when(qi == 0)
    def _():
        x = x_ref[0]                                               # (N_pad, C) bf16
        # Q tokens-major: canonical (N_pad, C) x (C, Cq)
        q = jnp.dot(x, wq_ref[...],
                    preferred_element_type=jnp.float32) + bq_ref[...]
        q_s[...] = q.astype(q_s.dtype)
        # K channel-major: (Cq, C) x (N_pad, C)^T  (A @ B^T form)
        k = lax.dot_general(wkt_ref[...], x, (((1,), (1,)), ((), ())),
                            preferred_element_type=jnp.float32) + bk_ref[...]
        k_s[...] = k.astype(k_s.dtype)
        # V channel-major, augmented with a row of ones so the attn matmul also
        # produces the softmax denominator as its last output row.
        v = lax.dot_general(wvt_ref[...], x, (((1,), (1,)), ((), ())),
                            preferred_element_type=jnp.float32) + bv_ref[...]
        v_s[:c, :] = v.astype(v_s.dtype)
        v_s[c:c + 1, :] = jnp.ones((1, n_pad), v_s.dtype)

    row0 = pl.multiple_of(qi * tq, tq)
    q = q_s[pl.ds(row0, tq), :]                                    # (TQ, Cq) bf16

    # energy = (scaled Q) @ K  -> canonical (TQ, Cq) x (Cq, N_pad), f32 accum.
    energy = jnp.dot(q, k_s[...], preferred_element_type=jnp.float32)

    if n_pad != n_valid:                                           # mask padded keys
        col = lax.broadcasted_iota(jnp.int32, (tq, n_pad), 1)
        energy = jnp.where(col < n_valid, energy, -1e30)

    # Numerically stable softmax; normalization deferred past the second matmul.
    m = jnp.max(energy, axis=-1, keepdims=True)
    p = jnp.exp(energy - m).astype(v_s.dtype)                      # (TQ, N_pad) bf16, in [0,1]

    # [V; 1] @ p^T -> (C+1, TQ): rows [0, C) = unnormalized output, row C = denom.
    out_ext = lax.dot_general(v_s[...], p, (((1,), (1,)), ((), ())),
                              preferred_element_type=jnp.float32)
    numer = out_ext[:c, :]                                         # (C, TQ) f32
    denom = out_ext[c:c + 1, :]                                    # (1, TQ) f32, >= 1
    o_ref[0] = (numer * pl.reciprocal(denom, approx=True)).astype(o_ref.dtype)


def bam_attention_pallas(x_tok, params, key_channel):
    """x_tok: (B, N, C) pooled tokens (bf16). Returns channel-major (B, C, N) f32."""
    B, N, C = x_tok.shape
    Cq = params["wq"].shape[1]
    scale = float(key_channel) ** (-0.5)

    # TPU-info driven tiling / VMEM budget (64 MiB v7x vs 128 MiB v5e/v6e).
    try:
        vmem_cap = int(pltpu.get_tpu_info().vmem_capacity_bytes)
    except Exception:
        vmem_cap = 128 * 1024 * 1024
    vmem_limit = min(96 << 20, max(32 << 20, vmem_cap - (16 << 20)))

    # Pad the token count to a 128 multiple for large, non-aligned N: keeps the
    # (TQ, N) energy working set bounded and stores (8,128)-aligned.
    if N > 512 and N % 128 != 0:
        n_pad = 128 * (-(-N // 128))
    else:
        n_pad = N
    if n_pad != N:
        x_tok = jnp.pad(x_tok, ((0, 0), (0, n_pad - N), (0, 0)))

    tq = _pick_tq(n_pad, vmem_cap)
    nq = n_pad // tq

    # Fold the (C/4)^-0.5 softmax scale into Wq/bq; pre-transpose Wk/Wv once so
    # the projection dots write scratch in channel-major layout; bf16 for MXU.
    wq = (params["wq"] * scale).astype(jnp.bfloat16)               # (C, Cq)
    bq = (params["bq"] * scale).astype(jnp.float32)                # (1, Cq)
    wkt = params["wk"].T.astype(jnp.bfloat16)                      # (Cq, C)
    bk = params["bk"].reshape(Cq, 1).astype(jnp.float32)           # (Cq, 1)
    wvt = params["wv"].T.astype(jnp.bfloat16)                      # (C, C)
    bv = params["bv"].reshape(C, 1).astype(jnp.float32)            # (C, 1)

    kernel = functools.partial(_bam_attn_kernel, c=C, tq=tq,
                               n_valid=N, n_pad=n_pad)

    grid_spec = pltpu.PrefetchScalarGridSpec(
        num_scalar_prefetch=0,
        grid=(B, nq),
        in_specs=[
            pl.BlockSpec((1, n_pad, C), lambda b, qi: (b, 0, 0)),  # pooled tokens
            pl.BlockSpec((C, Cq), lambda b, qi: (0, 0)),           # Wq (scaled)
            pl.BlockSpec((1, Cq), lambda b, qi: (0, 0)),           # bq (scaled)
            pl.BlockSpec((Cq, C), lambda b, qi: (0, 0)),           # Wk^T
            pl.BlockSpec((Cq, 1), lambda b, qi: (0, 0)),           # bk
            pl.BlockSpec((C, C), lambda b, qi: (0, 0)),            # Wv^T
            pl.BlockSpec((C, 1), lambda b, qi: (0, 0)),            # bv
        ],
        out_specs=pl.BlockSpec((1, C, tq), lambda b, qi: (b, 0, qi)),
        scratch_shapes=[
            pltpu.VMEM((n_pad, Cq), jnp.bfloat16),      # Q  (tokens-major)
            pltpu.VMEM((Cq, n_pad), jnp.bfloat16),      # K  (channel-major)
            pltpu.VMEM((C + 1, n_pad), jnp.bfloat16),   # [V; ones] (channel-major)
        ],
    )

    out_cm = pl.pallas_call(
        kernel,
        out_shape=jax.ShapeDtypeStruct((B, C, n_pad), jnp.float32),
        grid_spec=grid_spec,
        compiler_params=pltpu.CompilerParams(
            # Batch axis independent -> megacore; the query-tile axis reuses the
            # per-batch Q/K/V scratch so it must stay sequential.
            dimension_semantics=("parallel", "arbitrary"),
            vmem_limit_bytes=vmem_limit,
        ),
    )(x_tok, wq, bq, wkt, bk, wvt, bv)

    return out_cm[:, :, :N] if n_pad != N else out_cm


def bam_forward(inp, params, ds=4):
    """inp: (B, C, H, W) NCHW float32. Returns the same shape."""
    B, C, H, W = inp.shape
    assert C % 4 == 0, "in_dim must be divisible by 4"
    assert H % ds == 0 and W % ds == 0, "spatial dims must be divisible by ds"
    key_channel = C // 4
    h, w = H // ds, W // ds
    N = h * w

    # AvgPool2d(ds)  (thin XLA glue on the small pooled grid)
    x = inp.reshape(B, C, h, ds, w, ds).mean(axis=(3, 5))          # (B, C, h, w)

    # channel-major -> token-major; cast once to bf16 for the MXU path
    x_tok = x.reshape(B, C, N).transpose(0, 2, 1).astype(jnp.bfloat16)

    # Kernel emits channel-major (B, C, N) directly -> no output transpose.
    out_cm = bam_attention_pallas(x_tok, params, key_channel)      # (B, C, N) f32
    out = out_cm.reshape(B, C, h, w)

    # F.interpolate(..., [h*ds, w*ds]) default 'nearest' == ds-fold replication;
    # repeat + residual add fuse into a single HBM pass under XLA.
    # TODO(synk): fuse this upsample + residual epilogue into the Pallas kernel.
    out = jnp.repeat(jnp.repeat(out, ds, axis=2), ds, axis=3)      # (B, C, H, W)

    # NOTE: gamma is defined in the PyTorch __init__ but unused in forward().
    return out + inp


def init_params(key, in_dim):
    """Deterministic synthetic init matching the Conv2d 1x1 shapes.
    Weights stored pre-transposed as (C_in, C_out) for token-major matmuls."""
    cq = in_dim // 4
    k = jax.random.split(key, 6)
    s = 1.0 / jnp.sqrt(in_dim)
    return {
        "wq": (jax.random.normal(k[0], (in_dim, cq)) * s).astype(jnp.float32),
        "bq": (jax.random.normal(k[1], (1, cq)) * s).astype(jnp.float32),
        "wk": (jax.random.normal(k[2], (in_dim, cq)) * s).astype(jnp.float32),
        "bk": (jax.random.normal(k[3], (1, cq)) * s).astype(jnp.float32),
        "wv": (jax.random.normal(k[4], (in_dim, in_dim)) * s).astype(jnp.float32),
        "bv": (jax.random.normal(k[5], (1, in_dim)) * s).astype(jnp.float32),
    }


if __name__ == "__main__":
    key = jax.random.PRNGKey(0)
    k_x, k_p = jax.random.split(key)

    B, C, H, W = 2, 8, 16, 16     # in_dim=8 (divisible by 4), ds=4 -> 4x4 pooled, N=16
    ds = 4

    x = jax.random.normal(k_x, (B, C, H, W), dtype=jnp.float32)
    params = init_params(k_p, C)

    out = bam_forward(x, params, ds=ds)
    out = jax.block_until_ready(out)

    assert out.shape == (B, C, H, W)
    assert jnp.all(jnp.isfinite(out))
    print("KERNEL_OK")
</pallas_src>

<mosaic_0001>
module attributes {stable_mosaic.version = 11 : i64} {
  func.func @_bam_attn_kernel(%arg0: i32, %arg1: i32, %arg2: memref<1x16x8xbf16, #tpu.memory_space<vmem>>, %arg3: memref<8x2xbf16, #tpu.memory_space<vmem>>, %arg4: memref<1x2xf32, #tpu.memory_space<vmem>>, %arg5: memref<2x8xbf16, #tpu.memory_space<vmem>>, %arg6: memref<2x1xf32, #tpu.memory_space<vmem>>, %arg7: memref<8x8xbf16, #tpu.memory_space<vmem>>, %arg8: memref<8x1xf32, #tpu.memory_space<vmem>>, %arg9: memref<1x8x16xf32, #tpu.memory_space<vmem>>, %arg10: memref<16x2xbf16, #tpu.memory_space<vmem>>, %arg11: memref<2x16xbf16, #tpu.memory_space<vmem>>, %arg12: memref<9x16xbf16, #tpu.memory_space<vmem>>) attributes {dimension_semantics = [#tpu.dimension_semantics<parallel>, #tpu.dimension_semantics<arbitrary>], iteration_bounds = array<i64: 2, 1>, scalar_prefetch = 0 : i64, scratch_operands = 3 : i64, tpu.core_type = #tpu.core_type<tc>, window_params = [{transform_indices = @transform_0, window_bounds = array<i64: 1, 16, 8>}, {pipeline_mode = #tpu.pipeline_mode<synchronous>, transform_indices = @transform_1, window_bounds = array<i64: 8, 2>}, {pipeline_mode = #tpu.pipeline_mode<synchronous>, transform_indices = @transform_2, window_bounds = array<i64: 1, 2>}, {pipeline_mode = #tpu.pipeline_mode<synchronous>, transform_indices = @transform_3, window_bounds = array<i64: 2, 8>}, {pipeline_mode = #tpu.pipeline_mode<synchronous>, transform_indices = @transform_4, window_bounds = array<i64: 2, 1>}, {pipeline_mode = #tpu.pipeline_mode<synchronous>, transform_indices = @transform_5, window_bounds = array<i64: 8, 8>}, {pipeline_mode = #tpu.pipeline_mode<synchronous>, transform_indices = @transform_6, window_bounds = array<i64: 8, 1>}, {transform_indices = @transform_7, window_bounds = array<i64: 1, 8, 16>}]} {
    %c0_i32 = arith.constant 0 : i32
    %0 = arith.cmpi eq, %arg1, %c0_i32 : i32
    %1 = arith.extui %0 : i1 to i32
    %c0_i32_0 = arith.constant 0 : i32
    %2 = arith.cmpi ne, %1, %c0_i32_0 : i32
    scf.if %2 {
      %c0_10 = arith.constant 0 : index
      %c0_11 = arith.constant 0 : index
      %c0_12 = arith.constant 0 : index
      %25 = vector.load %arg2[%c0_10, %c0_11, %c0_12] : memref<1x16x8xbf16, #tpu.memory_space<vmem>>, vector<1x16x8xbf16>
      %26 = vector.shape_cast %25 : vector<1x16x8xbf16> to vector<16x8xbf16>
      %c0_13 = arith.constant 0 : index
      %c0_14 = arith.constant 0 : index
      %27 = vector.load %arg3[%c0_13, %c0_14] : memref<8x2xbf16, #tpu.memory_space<vmem>>, vector<8x2xbf16>
      %cst_15 = arith.constant dense<0.000000e+00> : vector<16x2xf32>
      %28 = tpu.matmul %26, %27, %cst_15 {dimension_numbers = #tpu.dot_dimension_numbers<[1], [0], [0], [1], [0, 0, 1, 1], [], []>} : vector<16x8xbf16>, vector<8x2xbf16>, vector<16x2xf32> -> vector<16x2xf32>
      %c0_16 = arith.constant 0 : index
      %c0_17 = arith.constant 0 : index
      %29 = vector.load %arg4[%c0_16, %c0_17] : memref<1x2xf32, #tpu.memory_space<vmem>>, vector<1x2xf32>
      %30 = vector.broadcast %29 : vector<1x2xf32> to vector<16x2xf32>
      %31 = arith.addf %28, %30 : vector<16x2xf32>
      %32 = arith.truncf %31 : vector<16x2xf32> to vector<16x2xbf16>
      %c0_18 = arith.constant 0 : index
      %c0_19 = arith.constant 0 : index
      %33 = vector.load %arg10[%c0_18, %c0_19] : memref<16x2xbf16, #tpu.memory_space<vmem>>, vector<16x2xbf16>
      tpu.vector_store %arg10[%c0_18, %c0_19], %32 {strides = array<i32>} : memref<16x2xbf16, #tpu.memory_space<vmem>>, vector<16x2xbf16>,
      %c0_20 = arith.constant 0 : index
      %c0_21 = arith.constant 0 : index
      %34 = vector.load %arg5[%c0_20, %c0_21] : memref<2x8xbf16, #tpu.memory_space<vmem>>, vector<2x8xbf16>
      %cst_22 = arith.constant dense<0.000000e+00> : vector<2x16xf32>
      %35 = tpu.matmul %34, %26, %cst_22 {dimension_numbers = #tpu.dot_dimension_numbers<[1], [1], [0], [0], [0, 0, 1, 0], [], []>} : vector<2x8xbf16>, vector<16x8xbf16>, vector<2x16xf32> -> vector<2x16xf32>
      %c0_23 = arith.constant 0 : index
      %c0_24 = arith.constant 0 : index
      %36 = vector.load %arg6[%c0_23, %c0_24] : memref<2x1xf32, #tpu.memory_space<vmem>>, vector<2x1xf32>
      %37 = vector.broadcast %36 : vector<2x1xf32> to vector<2x16xf32>
      %38 = arith.addf %35, %37 : vector<2x16xf32>
      %39 = arith.truncf %38 : vector<2x16xf32> to vector<2x16xbf16>
      %c0_25 = arith.constant 0 : index
      %c0_26 = arith.constant 0 : index
      %40 = vector.load %arg11[%c0_25, %c0_26] : memref<2x16xbf16, #tpu.memory_space<vmem>>, vector<2x16xbf16>
      tpu.vector_store %arg11[%c0_25, %c0_26], %39 {strides = array<i32>} : memref<2x16xbf16, #tpu.memory_space<vmem>>, vector<2x16xbf16>,
      %c0_27 = arith.constant 0 : index
      %c0_28 = arith.constant 0 : index
      %41 = vector.load %arg7[%c0_27, %c0_28] : memref<8x8xbf16, #tpu.memory_space<vmem>>, vector<8x8xbf16>
      %cst_29 = arith.constant dense<0.000000e+00> : vector<8x16xf32>
      %42 = tpu.matmul %41, %26, %cst_29 {dimension_numbers = #tpu.dot_dimension_numbers<[1], [1], [0], [0], [0, 0, 1, 0], [], []>} : vector<8x8xbf16>, vector<16x8xbf16>, vector<8x16xf32> -> vector<8x16xf32>
      %c0_30 = arith.constant 0 : index
      %c0_31 = arith.constant 0 : index
      %43 = vector.load %arg8[%c0_30, %c0_31] : memref<8x1xf32, #tpu.memory_space<vmem>>, vector<8x1xf32>
      %44 = vector.broadcast %43 : vector<8x1xf32> to vector<8x16xf32>
      %45 = arith.addf %42, %44 : vector<8x16xf32>
      %46 = arith.truncf %45 : vector<8x16xf32> to vector<8x16xbf16>
      %c0_32 = arith.constant 0 : index
      %c0_33 = arith.constant 0 : index
      %47 = vector.load %arg12[%c0_32, %c0_33] : memref<9x16xbf16, #tpu.memory_space<vmem>>, vector<8x16xbf16>
      tpu.vector_store %arg12[%c0_32, %c0_33], %46 {strides = array<i32>} : memref<9x16xbf16, #tpu.memory_space<vmem>>, vector<8x16xbf16>,
      %cst_34 = arith.constant 1.000000e+00 : bf16
      %48 = vector.broadcast %cst_34 : bf16 to vector<1x16xbf16>
      %c8 = arith.constant 8 : index
      %c0_35 = arith.constant 0 : index
      %49 = vector.load %arg12[%c8, %c0_35] : memref<9x16xbf16, #tpu.memory_space<vmem>>, vector<1x16xbf16>
      tpu.vector_store %arg12[%c8, %c0_35], %48 {strides = array<i32>} : memref<9x16xbf16, #tpu.memory_space<vmem>>, vector<1x16xbf16>,
    } else {
    }
    %c16_i32 = arith.constant 16 : i32
    %3 = arith.muli %arg1, %c16_i32 : i32
    %4 = tpu.assume_multiple %3, 16 : i32
    %5 = arith.index_cast %4 : i32 to index
    %c0 = arith.constant 0 : index
    %6 = vector.load %arg10[%5, %c0] : memref<16x2xbf16, #tpu.memory_space<vmem>>, vector<16x2xbf16>
    %c0_1 = arith.constant 0 : index
    %c0_2 = arith.constant 0 : index
    %7 = vector.load %arg11[%c0_1, %c0_2] : memref<2x16xbf16, #tpu.memory_space<vmem>>, vector<2x16xbf16>
    %cst = arith.constant dense<0.000000e+00> : vector<16x16xf32>
    %8 = tpu.matmul %6, %7, %cst {dimension_numbers = #tpu.dot_dimension_numbers<[1], [0], [0], [1], [0, 0, 1, 1], [], []>} : vector<16x2xbf16>, vector<2x16xbf16>, vector<16x16xf32> -> vector<16x16xf32>
    %cst_3 = arith.constant dense<0xFF800000> : vector<16xf32>
    %9 = vector.multi_reduction <maximumf>, %8, %cst_3 [1] : vector<16x16xf32> to vector<16xf32>
    %10 = vector.shape_cast %9 : vector<16xf32> to vector<16x1xf32>
    %11 = vector.broadcast %10 : vector<16x1xf32> to vector<16x16xf32>
    %12 = arith.subf %8, %11 : vector<16x16xf32>
    %13 = math.exp %12 : vector<16x16xf32>
    %14 = arith.truncf %13 : vector<16x16xf32> to vector<16x16xbf16>
    %c0_4 = arith.constant 0 : index
    %c0_5 = arith.constant 0 : index
    %15 = vector.load %arg12[%c0_4, %c0_5] : memref<9x16xbf16, #tpu.memory_space<vmem>>, vector<9x16xbf16>
    %cst_6 = arith.constant dense<0.000000e+00> : vector<9x16xf32>
    %16 = tpu.matmul %15, %14, %cst_6 {dimension_numbers = #tpu.dot_dimension_numbers<[1], [1], [0], [0], [0, 0, 1, 0], [], []>} : vector<9x16xbf16>, vector<16x16xbf16>, vector<9x16xf32> -> vector<9x16xf32>
    %17 = vector.extract_strided_slice %16 {offsets = [0, 0], sizes = [8, 16], strides = [1, 1]} : vector<9x16xf32> to vector<8x16xf32>
    %18 = vector.extract_strided_slice %16 {offsets = [8, 0], sizes = [1, 16], strides = [1, 1]} : vector<9x16xf32> to vector<1x16xf32>
    %19 = tpu.reciprocal %18 {approx = true} : vector<1x16xf32> -> vector<1x16xf32>
    %20 = vector.broadcast %19 : vector<1x16xf32> to vector<8x16xf32>
    %21 = arith.mulf %17, %20 : vector<8x16xf32>
    %c0_7 = arith.constant 0 : index
    %c0_8 = arith.constant 0 : index
    %c0_9 = arith.constant 0 : index
    %22 = vector.load %arg9[%c0_7, %c0_8, %c0_9] : memref<1x8x16xf32, #tpu.memory_space<vmem>>, vector<1x8x16xf32>
    %23 = vector.shape_cast %22 : vector<1x8x16xf32> to vector<8x16xf32>
    %24 = vector.shape_cast %21 : vector<8x16xf32> to vector<1x8x16xf32>
    tpu.vector_store %arg9[%c0_7, %c0_8, %c0_9], %24 {strides = array<i32>} : memref<1x8x16xf32, #tpu.memory_space<vmem>>, vector<1x8x16xf32>,
    return
  }
  func.func @transform_0(%arg0: i32, %arg1: i32) -> (i32, i32, i32) {
    %c0_i32 = arith.constant 0 : i32
    %c0_i32_0 = arith.constant 0 : i32
    %c0_i32_1 = arith.constant 0 : i32
    return %arg0, %c0_i32, %c0_i32_0 : i32, i32, i32
  }
  func.func @transform_1(%arg0: i32, %arg1: i32) -> (i32, i32) {
    %c0_i32 = arith.constant 0 : i32
    %c0_i32_0 = arith.constant 0 : i32
    %c0_i32_1 = arith.constant 0 : i32
    return %c0_i32, %c0_i32_0 : i32, i32
  }
  func.func @transform_2(%arg0: i32, %arg1: i32) -> (i32, i32) {
    %c0_i32 = arith.constant 0 : i32
    %c0_i32_0 = arith.constant 0 : i32
    %c0_i32_1 = arith.constant 0 : i32
    return %c0_i32, %c0_i32_0 : i32, i32
  }
  func.func @transform_3(%arg0: i32, %arg1: i32) -> (i32, i32) {
    %c0_i32 = arith.constant 0 : i32
    %c0_i32_0 = arith.constant 0 : i32
    %c0_i32_1 = arith.constant 0 : i32
    return %c0_i32, %c0_i32_0 : i32, i32
  }
  func.func @transform_4(%arg0: i32, %arg1: i32) -> (i32, i32) {
    %c0_i32 = arith.constant 0 : i32
    %c0_i32_0 = arith.constant 0 : i32
    %c0_i32_1 = arith.constant 0 : i32
    return %c0_i32, %c0_i32_0 : i32, i32
  }
  func.func @transform_5(%arg0: i32, %arg1: i32) -> (i32, i32) {
    %c0_i32 = arith.constant 0 : i32
    %c0_i32_0 = arith.constant 0 : i32
    %c0_i32_1 = arith.constant 0 : i32
    return %c0_i32, %c0_i32_0 : i32, i32
  }
  func.func @transform_6(%arg0: i32, %arg1: i32) -> (i32, i32) {
    %c0_i32 = arith.constant 0 : i32
    %c0_i32_0 = arith.constant 0 : i32
    %c0_i32_1 = arith.constant 0 : i32
    return %c0_i32, %c0_i32_0 : i32, i32
  }
  func.func @transform_7(%arg0: i32, %arg1: i32) -> (i32, i32, i32) {
    %c0_i32 = arith.constant 0 : i32
    %c0_i32_0 = arith.constant 0 : i32
    return %arg0, %c0_i32, %arg1 : i32, i32, i32
  }
}

</mosaic_0001>

<bundles_post_ra>
// kernel: tpu_custom_call.1
= control target key start
LH: loop header
LB: loop body
LE: loop exit
PB: predicated region body
PF: predicated region fallthrough
CT: control target
= control target key end

     0   :  { %12 = vsyncpa [#allocation6], 0  ;;  %s1096_s0 = inlined_call_operand.vmem [shape: bf16[2,16,8], index: 0, kind: input, shape index: {}]   ;;  %s1097_s1 = inlined_call_operand.vmem [shape: bf16[8,2], index: 1, kind: input, shape index: {}]   ;;  %s1098_s2 = inlined_call_operand.vmem [shape: f32[1,2], index: 2, kind: input, shape index: {}]   ;;  %s1099_s3 = inlined_call_operand.vmem [shape: bf16[2,8], index: 3, kind: input, shape index: {}]   ;;  %s1100_s4 = inlined_call_operand.vmem [shape: f32[2,1], index: 4, kind: input, shape index: {}]   ;;  %s1101_s5 = inlined_call_operand.vmem [shape: bf16[8,8], index: 5, kind: input, shape index: {}]   ;;  %s1102_s6 = inlined_call_operand.vmem [shape: f32[8,1], index: 6, kind: input, shape index: {}]   ;;  %s1103_s7 = inlined_call_operand.hbm [shape: f32[2,8,16], index: 7, kind: output, shape index: {}]  }
   0x1   :  { %14 = vsyncpa [#allocation6 + $0x1], 0  ;;  %s963_s24 = smov 0   ;;  %s965_s25 = smov 0  }
   0x2   :  { %s967_s26 = smov 0   ;;  %s969_s27 = smov 0  }
   0x3   :  { %s971_s28 = smov 0   ;;  %s973_s29 = smov 0  }
   0x4 LB: > { %s706_s30 = sadd.s32 4294967295, %s917_s29   ;;  %s707_s8 = sadd.s32 4294967294, %s917_s29   ;;  %s917_s29 = sphi %s973_s29, %s20_s29   ;;  %s913_s28 = sphi %s971_s28, %s1110_s28   ;;  %s909_s27 = sphi %s969_s27, %s1109_s27   ;;  %s905_s26 = sphi %s967_s26, %s1108_s26   ;;  %s901_s25 = sphi %s965_s25, %s1107_s25   ;;  %s897_s24 = sphi %s963_s24, %s1106_s24  }
   0x5   : > { %s32_s9 = sadd.s32 1, %s913_s28  ;;  %s193_s10 = sadd.s32 1, %s905_s26 }
   0x6   : > { %p34_p0 = scmp.ge.s32.totalorder %s32_s9, 2  ;;  %p203_p1 = scmp.ne.s32.totalorder %s905_s26, %s901_s25 }
   0x7   : > { %p204_p2 = scmp.eq.s32.totalorder %s706_s30, 1  ;;  %p209_p3 = scmp.ne.s32.totalorder %s901_s25, %s897_s24 }
   0x8   : > { %s1112_s9 = smov (%p34_p0, %s32_s9), 0  ;;  %p210_p5 = scmp.eq.s32.totalorder %s707_s8, 1 }
   0x9   : > { %p1003_p4 = por %p204_p2, %p203_p1  ;;  %s188_s12 = ssub.s32 %s913_s28, %s1112_s9 }
   0xa   : > { %p710_p6 = scmp.ge.s32.totalorder %s917_s29, 1  ;;  %p191_p7 = scmp.eq.s32.totalorder %s188_s12, 0 }
   0xb   : > { %p1010_p8 = por %p210_p5, %p209_p3  ;;  %p254_p9 = scmp.lt.s32.totalorder %s917_s29, 3 }
   0xc   : > { %s1016_s14 = scalar_select %p191_p7, %s905_s26, %s193_s10  }
   0xd   : > { %p255_p10 = pnand %p710_p6, %p254_p9 }
   0xe   : > { %p286_p11 = scmp.lt.s32.totalorder (!%p255_p10), %s909_s27, 1  ;;  %s283_s19 = sand.u32 (!%p255_p10), 1, %s901_s25  }
   0xf   : > { %258 = sbr.rel (%p255_p10) target bundleno = 834 (0x342), region = 48  ;;  %s726_s21 = sshll.u32 (!%p255_p10), %s909_s27, 7 }
  0x10   : > { %s634_s10 = scalar_lea.hbm (!%p255_p10), %s1103_s7, %s726_s21  ;;  %s622_s12 = scalar_lea.sflag (!%p255_p10), [#allocation6], %s283_s19 }
  0x11   : > { %s922_s16 = smov (!%p255_p10), [#allocation5]  }
  0x14   : > { %v299_v0 = vld [vmem:[%s1097_s1] sm:$0xf]  ;;  %vm316_vm0 = vcmask 1043456   ;;  %v919_v1 = vmov 0.0   ;;  %s287_s17 = scalar_select %p286_p11, %s909_s27, 1  ;;  %vm920_vm1 = vmmov 0   ;;  %v615_v59 = vlaneseq }
  0x15   : > { %742 = vmatprep.subr.bf16.mxu0 %v919_v1  ;;  %748 = vmatprep.subr.bf16.mxu1 %v919_v1  ;;  %v318_v2 = vsel %vm316_vm0, %v299_v0, 0  ;;  %v373_v3 = vld [vmem:[%s1100_s4] sm:$0x3]  ;;  %v921_v4 = vmov 0   ;;  %vm312_vm2 = vcmask 64512   ;;  %vm423_vm3 = vcmask 122880  }
  0x16   : > { %743 = vmatpush3.bf16.msra.mxu0 %v318_v2  ;;  %744 = vmatprep.mubr.msk.bf16.mxu0 %vm920_vm1, %v919_v1  ;;  %s729_s20 = sshll.u32 %s287_s17, 3  ;;  %v372_v7 = vld [vmem:[%s1099_s3] sm:$0x1]  ;;  %vm479_vm4 = vsmask.f32 256  ;;  %vm369_vm6 = vcmask 11264  }
  0x17   : > { %750 = vmatprep.mubr.msk.bf16.mxu1 %vm920_vm1, %v919_v1  ;;  %830 = vset.pattern.permute.xlu0 %v921_v4  ;;  %s290_s23 = scalar_lea.vmem %s1096_s0, %s729_s20  ;;  %v481_v8 = vld [vmem:[#allocation4 + $0x4] sm:$0x1]  ;;  %vm480_vm5 = vmand %vm423_vm3, %vm479_vm4  ;;  %v425_v10 = vld [vmem:[%s1101_s5] sm:$0xf]  ;;  %vm501_vm7 = vcmask 1040384   ;;  %vm497_vm8 = vcmask 15360  }
  0x18   : > { %376 = vperm.xlu0 %830, %v373_v3   ;;  %754 = vmatprep.subr.bf16.mxu0 %v919_v1  ;;  %v832_v5 = vld [vmem:[%s290_s23] sm:$0xff]   ;;  %v482_v9 = vsel %vm480_vm5, 1065369472, %v481_v8  ;;  %vm546_vm9 = vcmask 130048   ;;  %vm476_vm10 = vcmask 125952   ;;  %v616_v60 = vshrl.u32 %v615_v59, 7 }
  0x19   : > { %831 = vset.pattern.permute.xlu1 %v921_v4  ;;  %v314_v6 = vsel %vm312_vm2, %v832_v5, 0  ;;  %745 = vmatmul.mubr.msk.bf16.vlgmr.msra.gmra.mxu0 %vm312_vm2, %v832_v5  ;;  %483 = vst [vmem:[#allocation4 + $0x4] sm:$0x1] %v482_v9  ;;  %v714_v11 = vld [vmem:[%s1098_s2] ss:$0 sm:$0xff]  ;;  %s711_s20 = sshll.u32 %s283_s19, 3 }
  0x1a   : > { %749 = vmatpush3.bf16.xpose.msra.mxu1 %v314_v6  ;;  %755 = vmatpush3.bf16.xpose.msra.mxu0 %v314_v6  ;;  %v426_v36 = vld [vmem:[%s1102_s6] sm:$0xff]  ;;  %v617_v61 = vsub.s32 0, %v616_v60  ;;  %s285_s22 = scalar_lea.vmem [#allocation5], %s711_s20  ;;  %s845_s17 = sshll.u32 %s922_s16, 4  ;;  %s846_s17 = int_to_ptr.vmem [resolvable:$false] %s845_s17 }
  0x1b   : > { %760 = vmatprep.subr.bf16.mxu1 %v919_v1  ;;  %756 = vmatprep.mubr.msk.bf16.mxu0 %vm920_vm1, %v919_v1  ;;  %s636_s23 = sshll.u32 %s285_s22, 4  ;;  %s847_s27 = scalar_lea.vmem %s846_s17, 256  ;;  %s637_s23 = int_to_ptr.vmem [resolvable:$true] %s636_s23 }
  0x1c   : > { %766 = vmatprep.subr.bf16.mxu0 %v919_v1  ;;  %s841_s15 = scalar_lea.vmem %s637_s23, 128  ;;  %p848_p1 = scmp.lt.s32.totalorder %s637_s23, %s846_s17 }
  0x1d   : > { %p842_p12 = scmp.ne.s32.totalorder %s637_s23, %s841_s15  ;;  %p849_p2 = scmp.lt.s32.totalorder %s847_s27, %s841_s15 }
  0x1f   : > { %p843_p13 = pnand %p842_p12, %p1003_p4  ;;  %p850_p3 = por %p849_p2, %p848_p1 }
  0x21   : > { %751 = vmatmul.mubr.msk.bf16.vlgmr.msra.gmra.mxu1 %vm312_vm2, %v372_v7  ;;  %757 = vmatmul.mubr.msk.bf16.vlgmr.msra.gmra.mxu0 %vm312_vm2, %v425_v10  ;;  %p844_p0 = pneg %p843_p13 }
  0x22   : > { %762 = vmatprep.mubr.msk.bf16.mxu1 %vm920_vm1, %v919_v1  ;;  %768 = vmatprep.mubr.msk.bf16.mxu0 %vm920_vm1, %v919_v1 }
  0x23   : > { %p851_p5 = pnand %p850_p3, %p844_p0 }
  0x93   : > { %v377_v18 = vpop.permute.xlu0 %376 }
  0xd9   : > { %v354_v12 = vpop.f32.mrf.mxu0 }
  0xda   : > { %v355_v13 = vadd.f32 %v714_v11, %v354_v12 }
  0xdb   : > { %v746_v14 = vpop.f32.mrf.mxu0 }
  0xdc   : > { %v730_v15 = vpack.c.bf16 %v355_v13, %v355_v13 }
  0xdd   : > { %v357_v16 = vpop.f32.mrf.mxu0 }
  0xde   : > { %370 = vst.msk [vmem:[#allocation2] sm:$0xf] %vm369_vm6, %v730_v15  ;;  %v358_v17 = vadd.f32 %v714_v11, %v357_v16 }
  0xdf   : > { %v747_v19 = vpop.f32.mrf.mxu0 }
  0xe0   : > { %v731_v20 = vpack.c.bf16 %v358_v17, %v358_v17 }
  0xe1   : > { %v416_v21 = vpop.f32.mrf.mxu1  ;;  %v469_v37 = vpop.f32.mrf.mxu0 }
  0xe2   : > { %371 = vst.msk [vmem:[#allocation2 + $0x4] sm:$0xf] %vm369_vm6, %v731_v20  ;;  %v417_v22 = vadd.f32 %v416_v21, %v377_v18 }
  0xe3   : > { %v752_v23 = vpop.f32.mrf.mxu1  ;;  %v758_v38 = vpop.f32.mrf.mxu0 }
  0xe4   : > { %v422_v24 = vpack.c.bf16 %v417_v22, %v417_v22 }
  0xe5   : > { %v419_v25 = vpop.f32.mrf.mxu1  ;;  %v472_v39 = vpop.f32.mrf.mxu0 }
  0xe6   : > { %424 = vst.msk [vmem:[#allocation3] sm:$0x1] %vm423_vm3, %v422_v24 }
  0xe7   : > { %v753_v26 = vpop.f32.mrf.mxu1  ;;  %v759_v40 = vpop.f32.mrf.mxu0 }
  0xe9   : > { %v833_v29 = vld [vmem:[#allocation2] sm:$0xff]  }
  0xed   : > { %v491_v27 = vld [vmem:[#allocation3] sm:$0x1] }
  0xee   : > { %v503_v28 = vsel %vm501_vm7, %v491_v27, 0 }
  0xef   : > { %761 = vmatpush3.bf16.msra.mxu1 %v503_v28 }
  0xf2   : > { %763 = vmatmul.mubr.msk.bf16.vlgmr.msra.gmra.mxu1 %vm497_vm8, %v833_v29 }
 0x1b2   : > { %v539_v30 = vpop.f32.mrf.mxu1 }
 0x1b3   : > { %v547_v31 = vsel %vm546_vm9, %v539_v30, -inf }
 0x1b4   : > { %548 = vmax.xlane.f32.xlu0 %v547_v31  ;;  %v764_v32 = vpop.f32.mrf.mxu1 }
 0x1b6   : > { %v542_v33 = vpop.f32.mrf.mxu1 }
 0x1b7   : > { %v550_v34 = vsel %vm546_vm9, %v542_v33, -inf }
 0x1b8   : > { %551 = vmax.xlane.f32.xlu1 %v550_v34  ;;  %v765_v35 = vpop.f32.mrf.mxu1 }
 0x1c9   : > { %429 = vperm.xlu1 %831, %v426_v36  }
 0x23d   : > { %v549_v41 = vpop.xlane.xlu0 %548 }
 0x23e   : > { %v553_v42 = vsub.f32 %v539_v30, %v549_v41 }
 0x240   : > { %v555_v43 = vmul.f32 1.442695, %v553_v42 }
 0x241   : > { %v552_v44 = vpop.xlane.xlu1 %551 }
 0x242   : > { %v554_v45 = vsub.f32 %v542_v33, %v552_v44  ;;  %835 = vpow2.f32 %v555_v43 }
 0x244   : > { %v557_v46 = vmul.f32 1.442695, %v554_v45 }
 0x245   : > { %v430_v47 = vpop.permute.xlu1 %429 }
 0x246   : > { %837 = vpow2.f32 %v557_v46  ;;  %v470_v48 = vadd.f32 %v469_v37, %v430_v47 }
 0x248   : > { %v475_v49 = vpack.c.bf16 %v470_v48, %v470_v48 }
 0x24a   : > { %477 = vst.msk [vmem:[#allocation4] sm:$0xf] %vm476_vm10, %v475_v49 }
 0x24f   : > { %v836_v50 = vpop.eup %835 }
 0x251   : > { %v834_v54 = vld [vmem:[#allocation4] sm:$0x1f]  }
 0x253   : > { %v838_v51 = vpop.eup %837 }
 0x254   : > { %v559_v52 = vpack.c.bf16 %v838_v51, %v836_v50 }
 0x256   : > { %v571_v53 = vsel %vm546_vm9, %v559_v52, 0 }
 0x257   : > { %767 = vmatpush3.bf16.xpose.msra.mxu0 %v571_v53 }
 0x25e   : > { %769 = vmatmul.mubr.msk.bf16.vlgmr.msra.gmra.mxu0 %vm546_vm9, %v834_v54 }
 0x31e   : > { %v607_v55 = vpop.f32.mrf.mxu0 }
 0x320   : > { %v770_v56 = vpop.f32.mrf.mxu0 }
 0x322   : > { %v610_v57 = vpop.f32.mrf.mxu0 }
 0x323   : > { %839 = vrcp.f32 %v610_v57 }
 0x324   : > { %v771_v58 = vpop.f32.mrf.mxu0 }
 0x330   : > { %v840_v62 = vpop.eup %839 }
 0x331   : > { %v618_v63 = vrot.slane %v840_v62, %v617_v61 }
 0x333   : > { %v619_v0 = vmul.f32 %v618_v63, %v607_v55 }
 0x335   : > { %620 = vst.msk [vmem:[%s285_s22] sm:$0xff] %vm546_vm9, %v619_v0 }
 0x336   : > { %854 = shalt.err (!%p851_p5)
}
 0x337   : > { %s855_s18 = scalar_lea.hbm %s634_s10, 128  ;;  %s859_s21 = scalar_lea.hbm %s1103_s7, 256 }
 0x338   : > { %p856_p6 = scmp.ne.s32.totalorder %s634_s10, %s855_s18  ;;  %p860_p10 = scmp.lt.s32.totalorder %s634_s10, %s1103_s7 }
 0x339   : > { %p861_p11 = scmp.lt.s32.totalorder %s859_s21, %s855_s18 }
 0x33a   : > { %p857_p7 = pnand %p856_p6, %p1003_p4 }
 0x33b   : > { %p862_p12 = por %p861_p11, %p860_p10 }
 0x33c   : > { %p858_p9 = pneg %p857_p7 }
 0x33e   : > { %p863_p13 = pnand %p862_p12, %p858_p9 }
 0x340   : > { %866 = shalt.err (!%p863_p13)
}
 0x341   : > { %772 = dma.vmem_to_hbm [thread:$0]  (%p1003_p4), %s637_s23, 128, %s634_s10, %s622_s12  }
 0x342 PF: > { %p778_p0 = scmp.ge.s32.totalorder %s917_s29, 2  ;;  %s648_s8 = sand.u32 1, %s897_s24  }
 0x343   : > { %s649_s15 = scalar_lea.sflag [#allocation6], %s648_s8 }
 0x344   : > { %p775_p1 = pnand %p778_p0, %p1010_p8 }
 0x346   : > { %p776_p2 = pneg %p775_p1 }
 0x348   : > { %892 = dma.done.wait (%p776_p2), %s649_s15, 128  }
 0x349   : > { %894 = vsyncadd (%p776_p2), %s649_s15, 4294967168  ;;  %s20_s29 = sadd.s32 1, %s917_s29   ;;  %s1106_s24 = smov %s901_s25 }
 0x34a   : > { %p17_p3 = scmp.ge.s32.totalorder %s20_s29, 4   ;;  %s1107_s25 = smov %s905_s26 }
 0x34b   : > { %s1108_s26 = smov %s1016_s14  ;;  %s1109_s27 = smov %s913_s28 }
 0x34c   : > { %s1110_s28 = smov %s1112_s9  ;;  %19 = sbr.rel (!%p17_p3) target bundleno = 4 (0x4), region = 88 }
 0x351   :  { %654 = vsyncpa [#allocation6], 1 }
 0x352   :  { %656 = vsyncpa [#allocation6 + $0x1], 1 }

</bundles_post_ra>
